<compile_context>
chip_gen: v7x
topology: tpu7x:2x2x1
jax: 0.10.0
libtpu: 0.0.40
codegen_flags: <defaults>
</compile_context>

<pallas_src>
import functools

import jax
import jax.numpy as jnp
from jax.experimental import pallas as pl
from jax.experimental.pallas import tpu as pltpu

NEG_SLOPE = 0.01                      # PyTorch nn.LeakyReLU default
_VMEM_LIMIT = 32 * 1024 * 1024        # explicit scoped-VMEM limit (v5e..v7x safe)


def _leaky_relu(x):
    return jnp.where(x >= 0, x, NEG_SLOPE * x)


def _round_up(x, m):
    return ((x + m - 1) // m) * m


def _row_tile(n, pref=256):
    """Row-tile size: multiple of 8, <= pref (arrays get zero-padded to a multiple)."""
    return pref if n >= pref else _round_up(max(n, 1), 8)


# --------------------------------------------------------------------------
# Kernel A: one GCN layer, row-tiled over the adjacency.
#   out_tile = leaky_relu((A_tile @ h) @ W + b)
#   A_tile is bf16 from the boundary; h (full, constant index map -> DMA'd
#   once per call) and W are bf16; accumulation in f32.
# --------------------------------------------------------------------------
def _gcn_layer_kernel(a_ref, h_ref, w_ref, b_ref, o_ref):
    ah = jnp.dot(a_ref[...], h_ref[...], preferred_element_type=jnp.float32)
    y = jnp.dot(ah.astype(jnp.bfloat16), w_ref[...],
                preferred_element_type=jnp.float32) + b_ref[...]
    o_ref[...] = _leaky_relu(y).astype(o_ref.dtype)


def gcn_layer(a_bf16, h_bf16, w_bf16, b_f32, *, tm, out_dtype):
    n_pad = a_bf16.shape[0]
    f_in = h_bf16.shape[1]
    f_out = w_bf16.shape[1]
    flops = 2 * n_pad * n_pad * f_in + 2 * n_pad * f_in * f_out
    bytes_acc = (2 * n_pad * n_pad + 2 * n_pad * f_in + 2 * f_in * f_out
                 + n_pad * f_out * jnp.dtype(out_dtype).itemsize + 4 * f_out)
    return pl.pallas_call(
        _gcn_layer_kernel,
        out_shape=jax.ShapeDtypeStruct((n_pad, f_out), out_dtype),
        grid=(n_pad // tm,),
        in_specs=[
            pl.BlockSpec((tm, n_pad), lambda i: (i, 0)),       # A_hat row tile (bf16)
            pl.BlockSpec((n_pad, f_in), lambda i: (0, 0)),     # full h (bf16), fetched once
            pl.BlockSpec((f_in, f_out), lambda i: (0, 0)),     # W (bf16)
            pl.BlockSpec((1, f_out), lambda i: (0, 0)),        # bias (f32)
        ],
        out_specs=pl.BlockSpec((tm, f_out), lambda i: (i, 0)),
        compiler_params=pltpu.CompilerParams(
            dimension_semantics=("parallel",),
            vmem_limit_bytes=_VMEM_LIMIT),
        cost_estimate=pl.CostEstimate(flops=flops, transcendentals=0,
                                      bytes_accessed=bytes_acc),
    )(a_bf16, h_bf16, w_bf16, b_f32)


def encoder_forward(a_hat_pad, x_pad, enc_params, *, tm):
    """GCN stack: bf16 at the pallas_call boundary, inter-layer acts stay bf16."""
    a_bf = a_hat_pad.astype(jnp.bfloat16)
    h = x_pad.astype(jnp.bfloat16)
    num_layers = len(enc_params)
    for l, (w, b) in enumerate(enc_params):
        last = l == num_layers - 1
        h = gcn_layer(a_bf, h, w.astype(jnp.bfloat16), b.reshape(1, -1),
                      tm=tm, out_dtype=jnp.float32 if last else jnp.bfloat16)
    return h                                                   # (N_pad, E) f32


# --------------------------------------------------------------------------
# Kernel B: fused 2-layer decoder MLP  y = relu(x @ W1 + b1) @ W2 + b2
#   Row-tiled; intermediate activation never leaves VMEM; output width padded
#   to a multiple of 128 by the wrapper (lane-dense stores), sliced outside.
# --------------------------------------------------------------------------
def _mlp2_kernel(x_ref, w1_ref, b1_ref, w2_ref, b2_ref, o_ref):
    h = jnp.dot(x_ref[...], w1_ref[...],
                preferred_element_type=jnp.float32) + b1_ref[...]
    h = jnp.maximum(h, 0.0)                                    # ReLU (decoder)
    y = jnp.dot(h.astype(jnp.bfloat16), w2_ref[...],
                preferred_element_type=jnp.float32) + b2_ref[...]
    o_ref[...] = y.astype(o_ref.dtype)


def decoder_forward(h_bf16, w1, b1, w2, b2, *, tm):
    n_pad, f_in = h_bf16.shape
    f_mid = w1.shape[1]
    f_out = w2.shape[1]
    # Pad the narrow output width to 128 lanes; padded columns (zero weights,
    # zero bias) are exactly zero and sliced off below.
    f_out_pad = _round_up(f_out, 128)
    w2p = jnp.zeros((f_mid, f_out_pad), w2.dtype).at[:, :f_out].set(w2)
    b2p = jnp.zeros((f_out_pad,), b2.dtype).at[:f_out].set(b2)
    flops = 2 * n_pad * f_in * f_mid + 2 * n_pad * f_mid * f_out_pad
    out = pl.pallas_call(
        _mlp2_kernel,
        out_shape=jax.ShapeDtypeStruct((n_pad, f_out_pad), jnp.float32),
        grid=(n_pad // tm,),
        in_specs=[
            pl.BlockSpec((tm, f_in), lambda i: (i, 0)),
            pl.BlockSpec((f_in, f_mid), lambda i: (0, 0)),
            pl.BlockSpec((1, f_mid), lambda i: (0, 0)),
            pl.BlockSpec((f_mid, f_out_pad), lambda i: (0, 0)),
            pl.BlockSpec((1, f_out_pad), lambda i: (0, 0)),
        ],
        out_specs=pl.BlockSpec((tm, f_out_pad), lambda i: (i, 0)),
        compiler_params=pltpu.CompilerParams(
            dimension_semantics=("parallel",),
            vmem_limit_bytes=_VMEM_LIMIT),
        cost_estimate=pl.CostEstimate(
            flops=flops, transcendentals=0,
            bytes_accessed=2 * n_pad * f_in + 4 * n_pad * f_out_pad
            + 2 * (f_in * f_mid + f_mid * f_out_pad)),
    )(h_bf16, w1.astype(jnp.bfloat16), b1.reshape(1, -1),
      w2p.astype(jnp.bfloat16), b2p.reshape(1, -1))
    return out[:, :f_out]


# --------------------------------------------------------------------------
# Kernel C: FUSED global max/mean pooling + per-graph adjacency decode.
#   grid = (B, M_pad//tm): batch axis 'parallel', row-tile axis 'arbitrary'
#   (pooling accumulates in resident output blocks across it).
#   Node masks are built in-kernel from per-graph counts (scalar prefetch).
# --------------------------------------------------------------------------
def _pool_adj_kernel(cnt_ref, xp_ref, xpt_ref, adj_ref, mx_ref, mean_ref, *, tm):
    g = pl.program_id(0)
    r = pl.program_id(1)
    cnt = cnt_ref[g]
    m_pad = xpt_ref.shape[1]

    x = xp_ref[...]                                            # (tm, E) f32

    # ---- adjacency row tile: sigmoid(x_tile @ x_g^T), masked to real nodes --
    s = jnp.dot(x.astype(jnp.bfloat16), xpt_ref[...],
                preferred_element_type=jnp.float32)            # (tm, M_pad)
    row_ids = r * tm + jax.lax.broadcasted_iota(jnp.int32, (tm, 1), 0)
    col_ids = jax.lax.broadcasted_iota(jnp.int32, (1, m_pad), 1)
    mask2d = jnp.logical_and(row_ids < cnt, col_ids < cnt)
    adj_ref[...] = jnp.where(mask2d, jax.nn.sigmoid(s), 0.0).astype(adj_ref.dtype)

    # ---- pooling partials (padded rows are zero, so plain sum for the mean) -
    row_valid = row_ids < cnt                                  # (tm, 1)
    mx_part = jnp.max(jnp.where(row_valid, x, -jnp.inf), axis=0, keepdims=True)
    sum_part = jnp.sum(x, axis=0, keepdims=True)

    @pl.when(r == 0)
    def _():
        mx_ref[...] = jnp.full(mx_ref.shape, -jnp.inf, mx_ref.dtype)
        mean_ref[...] = jnp.zeros_like(mean_ref)

    mx_ref[...] = jnp.maximum(mx_ref[...], mx_part)
    mean_ref[...] = mean_ref[...] + sum_part

    @pl.when(r == pl.num_programs(1) - 1)
    def _():
        cntf = jnp.maximum(cnt.astype(jnp.float32), 1.0)
        mean_ref[...] = mean_ref[...] / cntf
        mx_ref[...] = jnp.where(cnt > 0, mx_ref[...], 0.0)     # empty-graph guard


def pool_and_adj(xp, xp_t_bf16, counts, *, tm, adj_dtype=jnp.float32):
    b, m_pad, e = xp.shape
    adj, mx, mean = pl.pallas_call(
        functools.partial(_pool_adj_kernel, tm=tm),
        out_shape=[
            jax.ShapeDtypeStruct((b, m_pad, m_pad), adj_dtype),
            jax.ShapeDtypeStruct((b, 1, e), jnp.float32),
            jax.ShapeDtypeStruct((b, 1, e), jnp.float32),
        ],
        grid_spec=pltpu.PrefetchScalarGridSpec(
            num_scalar_prefetch=1,
            grid=(b, m_pad // tm),
            in_specs=[
                pl.BlockSpec((None, tm, e), lambda g, r, cnts: (g, r, 0)),
                pl.BlockSpec((None, e, m_pad), lambda g, r, cnts: (g, 0, 0)),
            ],
            out_specs=[
                pl.BlockSpec((None, tm, m_pad), lambda g, r, cnts: (g, r, 0)),
                pl.BlockSpec((None, 1, e), lambda g, r, cnts: (g, 0, 0)),
                pl.BlockSpec((None, 1, e), lambda g, r, cnts: (g, 0, 0)),
            ],
        ),
        compiler_params=pltpu.CompilerParams(
            dimension_semantics=("parallel", "arbitrary"),
            vmem_limit_bytes=_VMEM_LIMIT),
        cost_estimate=pl.CostEstimate(
            flops=2 * b * m_pad * m_pad * e,
            transcendentals=b * m_pad * m_pad,
            bytes_accessed=b * (4 * m_pad * e + 2 * e * m_pad
                                + jnp.dtype(adj_dtype).itemsize * m_pad * m_pad
                                + 8 * e)),
    )(counts, xp, xp_t_bf16)
    return adj, mx.reshape(b, e), mean.reshape(b, e)


# --------------------------------------------------------------------------
# Model: parameters + forward glue
# --------------------------------------------------------------------------
def init_params(key, num_features, embedding_size, projection_emb, num_layers):
    def lin(k, fin, fout, scale=0.1):
        kw, kb = jax.random.split(k)
        return (scale * jax.random.normal(kw, (fin, fout), jnp.float32),
                scale * jax.random.normal(kb, (fout,), jnp.float32))

    keys = jax.random.split(key, num_layers + 4)
    enc = []
    fin = num_features
    for l in range(num_layers):
        enc.append(lin(keys[l], fin, embedding_size))
        fin = embedding_size
    dec1 = lin(keys[num_layers + 0], embedding_size, 128)
    dec2 = lin(keys[num_layers + 1], 128, num_features)
    proj1 = lin(keys[num_layers + 2], 2 * embedding_size, embedding_size)
    proj2 = lin(keys[num_layers + 3], embedding_size, projection_emb)
    return dict(enc=enc, dec=(dec1, dec2), proj=(proj1, proj2))


def normalized_adjacency(edge_index, num_nodes):
    src, dst = edge_index
    a = jnp.zeros((num_nodes, num_nodes), jnp.float32)
    a = a.at[src, dst].set(1.0)
    a = jnp.maximum(a, a.T)                         # symmetrize
    a = a + jnp.eye(num_nodes, dtype=jnp.float32)   # self loops
    deg = jnp.sum(a, axis=1)
    dinv = 1.0 / jnp.sqrt(deg)
    return a * dinv[:, None] * dinv[None, :]


def gae_projection_forward(params, x, edge_index, batch_ids, num_graphs,
                           max_nodes, get_pooling=False, adj_dtype=jnp.float32):
    n, f = x.shape
    e = params["enc"][-1][0].shape[1]

    # ---- dense normalized adjacency (GCN substitute for Graph_Encoder) -----
    a_hat = normalized_adjacency(edge_index, n)

    # ---- pad node axis to a row-tile multiple (zero rows; real rows exact) -
    tm_n = _row_tile(n)
    n_pad = _round_up(n, tm_n)
    a_pad = jnp.zeros((n_pad, n_pad), jnp.float32).at[:n, :n].set(a_hat)
    x_pad = jnp.zeros((n_pad, f), jnp.float32).at[:n, :].set(x)

    # ---- encoder stack (row-tiled, bf16 boundary, 1 pallas_call per layer) -
    x_enc_pad = encoder_forward(a_pad, x_pad, params["enc"], tm=tm_n)
    x_enc = x_enc_pad[:n]
    # TODO(synk): Graph_Encoder's distinct `h` output / `xs` accumulation is
    # unspecified (class not given); the final activation is used for both.
    h_enc_pad = x_enc_pad

    # ---- decoder: Linear(E,128) -> ReLU -> Linear(128,F) (fused, tiled) ----
    (wd1, bd1), (wd2, bd2) = params["dec"]
    recon_pad = decoder_forward(h_enc_pad.astype(jnp.bfloat16),
                                wd1, bd1, wd2, bd2, tm=tm_n)
    reconstructed_x = recon_pad[:n]

    # ---- scatter nodes into the padded per-graph (B, M_pad, E) layout ------
    tm_m = _row_tile(max_nodes)
    m_pad = _round_up(max_nodes, tm_m)
    counts = jnp.zeros((num_graphs,), jnp.int32).at[batch_ids].add(1)
    offsets = jnp.concatenate([jnp.zeros((1,), jnp.int32),
                               jnp.cumsum(counts)[:-1]])
    pos = jnp.arange(n, dtype=jnp.int32) - offsets[batch_ids]
    xp = jnp.zeros((num_graphs, m_pad, e), jnp.float32).at[batch_ids, pos].set(x_enc)
    xp_t = jnp.swapaxes(xp, 1, 2).astype(jnp.bfloat16)   # pre-transposed MXU RHS

    # ---- fused pooling (gmp/gap) + per-graph adjacency decode --------------
    # TODO(synk): adj_dtype can be set to bf16 on v6e/v7x to halve writeback.
    adj_pad, gmax, gmean = pool_and_adj(xp, xp_t, counts, tm=tm_m,
                                        adj_dtype=adj_dtype)
    adj_reconstructed = adj_pad[:, :max_nodes, :max_nodes].astype(jnp.float32)
    global_pooling = jnp.concatenate([gmax, gmean], axis=1)

    if get_pooling:
        return global_pooling, reconstructed_x, adj_reconstructed

    # ---- projection head: only num_graphs rows -> plain XLA (per perf review
    #      a dedicated pallas_call is pure launch/DMA overhead at B <= 8) -----
    # TODO(synk): Dropout(0.1) is identity (inference-mode forward).
    (wp1, bp1), (wp2, bp2) = params["proj"]
    hproj = _leaky_relu(global_pooling @ wp1 + bp1)
    projection = hproj @ wp2 + bp2
    return projection, reconstructed_x, adj_reconstructed


# --------------------------------------------------------------------------
# Demo / smoke test
# --------------------------------------------------------------------------
if __name__ == "__main__":
    num_features = 8
    embedding_size = 64
    projection_emb = 64
    num_layers = 4

    # Two graphs, 6 nodes each (N = 12), ring topology inside each graph.
    graph_sizes = [6, 6]
    num_graphs = len(graph_sizes)
    max_nodes = max(graph_sizes)
    n_nodes = sum(graph_sizes)

    batch_list, src_list, dst_list = [], [], []
    offset = 0
    for g, sz in enumerate(graph_sizes):
        batch_list += [g] * sz
        for i in range(sz):
            src_list.append(offset + i)
            dst_list.append(offset + (i + 1) % sz)
        offset += sz
    batch_ids = jnp.asarray(batch_list, jnp.int32)
    edge_index = jnp.asarray([src_list, dst_list], jnp.int32)

    key = jax.random.PRNGKey(0)
    kx, kp = jax.random.split(key)
    node_x = jax.random.normal(kx, (n_nodes, num_features), jnp.float32)
    params = init_params(kp, num_features, embedding_size, projection_emb, num_layers)

    projection, recon_x, adj_rec = gae_projection_forward(
        params, node_x, edge_index, batch_ids, num_graphs, max_nodes)

    jax.block_until_ready((projection, recon_x, adj_rec))
    assert projection.shape == (num_graphs, projection_emb)
    assert recon_x.shape == (n_nodes, num_features)
    assert adj_rec.shape == (num_graphs, max_nodes, max_nodes)
    assert bool(jnp.all(jnp.isfinite(projection)))
    assert bool(jnp.all(jnp.isfinite(recon_x)))
    assert bool(jnp.all(jnp.isfinite(adj_rec)))
    print("KERNEL_OK")
</pallas_src>

<mosaic_0001>
module attributes {stable_mosaic.version = 11 : i64} {
  func.func @_gcn_layer_kernel(%arg0: i32, %arg1: memref<16x16xbf16, #tpu.memory_space<vmem>>, %arg2: memref<16x8xbf16, #tpu.memory_space<vmem>>, %arg3: memref<8x64xbf16, #tpu.memory_space<vmem>>, %arg4: memref<1x64xf32, #tpu.memory_space<vmem>>, %arg5: memref<16x64xbf16, #tpu.memory_space<vmem>>) attributes {dimension_semantics = [#tpu.dimension_semantics<parallel>], iteration_bounds = array<i64: 1>, scalar_prefetch = 0 : i64, scratch_operands = 0 : i64, tpu.core_type = #tpu.core_type<tc>, window_params = [{transform_indices = @transform_0, window_bounds = array<i64: 16, 16>}, {pipeline_mode = #tpu.pipeline_mode<synchronous>, transform_indices = @transform_1, window_bounds = array<i64: 16, 8>}, {pipeline_mode = #tpu.pipeline_mode<synchronous>, transform_indices = @transform_2, window_bounds = array<i64: 8, 64>}, {pipeline_mode = #tpu.pipeline_mode<synchronous>, transform_indices = @transform_3, window_bounds = array<i64: 1, 64>}, {transform_indices = @transform_4, window_bounds = array<i64: 16, 64>}]} {
    %c0 = arith.constant 0 : index
    %c0_0 = arith.constant 0 : index
    %0 = vector.load %arg1[%c0, %c0_0] : memref<16x16xbf16, #tpu.memory_space<vmem>>, vector<16x16xbf16>
    %c0_1 = arith.constant 0 : index
    %c0_2 = arith.constant 0 : index
    %1 = vector.load %arg2[%c0_1, %c0_2] : memref<16x8xbf16, #tpu.memory_space<vmem>>, vector<16x8xbf16>
    %cst = arith.constant dense<0.000000e+00> : vector<16x8xf32>
    %2 = tpu.matmul %0, %1, %cst {dimension_numbers = #tpu.dot_dimension_numbers<[1], [0], [0], [1], [0, 0, 1, 1], [], []>} : vector<16x16xbf16>, vector<16x8xbf16>, vector<16x8xf32> -> vector<16x8xf32>
    %3 = arith.truncf %2 : vector<16x8xf32> to vector<16x8xbf16>
    %c0_3 = arith.constant 0 : index
    %c0_4 = arith.constant 0 : index
    %4 = vector.load %arg3[%c0_3, %c0_4] : memref<8x64xbf16, #tpu.memory_space<vmem>>, vector<8x64xbf16>
    %cst_5 = arith.constant dense<0.000000e+00> : vector<16x64xf32>
    %5 = tpu.matmul %3, %4, %cst_5 {dimension_numbers = #tpu.dot_dimension_numbers<[1], [0], [0], [1], [0, 0, 1, 1], [], []>} : vector<16x8xbf16>, vector<8x64xbf16>, vector<16x64xf32> -> vector<16x64xf32>
    %c0_6 = arith.constant 0 : index
    %c0_7 = arith.constant 0 : index
    %6 = vector.load %arg4[%c0_6, %c0_7] : memref<1x64xf32, #tpu.memory_space<vmem>>, vector<1x64xf32>
    %7 = vector.broadcast %6 : vector<1x64xf32> to vector<16x64xf32>
    %8 = arith.addf %5, %7 : vector<16x64xf32>
    %cst_8 = arith.constant 0.000000e+00 : f32
    %9 = vector.broadcast %cst_8 : f32 to vector<16x64xf32>
    %10 = arith.cmpf oge, %8, %9 : vector<16x64xf32>
    %cst_9 = arith.constant 0.00999999977 : f32
    %11 = vector.broadcast %cst_9 : f32 to vector<16x64xf32>
    %12 = arith.mulf %11, %8 : vector<16x64xf32>
    %13 = arith.select %10, %8, %12 : vector<16x64xi1>, vector<16x64xf32>
    %14 = arith.truncf %13 : vector<16x64xf32> to vector<16x64xbf16>
    %c0_10 = arith.constant 0 : index
    %c0_11 = arith.constant 0 : index
    %15 = vector.load %arg5[%c0_10, %c0_11] : memref<16x64xbf16, #tpu.memory_space<vmem>>, vector<16x64xbf16>
    tpu.vector_store %arg5[%c0_10, %c0_11], %14 {strides = array<i32>} : memref<16x64xbf16, #tpu.memory_space<vmem>>, vector<16x64xbf16>,
    return
  }
  func.func @transform_0(%arg0: i32) -> (i32, i32) {
    %c0_i32 = arith.constant 0 : i32
    %c0_i32_0 = arith.constant 0 : i32
    return %arg0, %c0_i32 : i32, i32
  }
  func.func @transform_1(%arg0: i32) -> (i32, i32) {
    %c0_i32 = arith.constant 0 : i32
    %c0_i32_0 = arith.constant 0 : i32
    %c0_i32_1 = arith.constant 0 : i32
    return %c0_i32, %c0_i32_0 : i32, i32
  }
  func.func @transform_2(%arg0: i32) -> (i32, i32) {
    %c0_i32 = arith.constant 0 : i32
    %c0_i32_0 = arith.constant 0 : i32
    %c0_i32_1 = arith.constant 0 : i32
    return %c0_i32, %c0_i32_0 : i32, i32
  }
  func.func @transform_3(%arg0: i32) -> (i32, i32) {
    %c0_i32 = arith.constant 0 : i32
    %c0_i32_0 = arith.constant 0 : i32
    %c0_i32_1 = arith.constant 0 : i32
    return %c0_i32, %c0_i32_0 : i32, i32
  }
  func.func @transform_4(%arg0: i32) -> (i32, i32) {
    %c0_i32 = arith.constant 0 : i32
    %c0_i32_0 = arith.constant 0 : i32
    return %arg0, %c0_i32 : i32, i32
  }
}

</mosaic_0001>

<bundles_post_ra>
// kernel: tpu_custom_call.1
= control target key start
LH: loop header
LB: loop body
LE: loop exit
PB: predicated region body
PF: predicated region fallthrough
CT: control target
= control target key end

     0   :  { %v226_v1 = vmov 0.0   ;;  %vm227_vm0 = vmmov 0   ;;  %vm34_vm1 = vcmask 130048   ;;  %s280_s0 = inlined_call_operand.vmem [shape: bf16[16,16], index: 0, kind: input, shape index: {}]   ;;  %s281_s1 = inlined_call_operand.vmem [shape: bf16[16,8], index: 1, kind: input, shape index: {}]   ;;  %s282_s2 = inlined_call_operand.vmem [shape: bf16[8,64], index: 2, kind: input, shape index: {}]   ;;  %s283_s3 = inlined_call_operand.vmem [shape: f32[1,64], index: 3, kind: input, shape index: {}]   ;;  %s284_s4 = inlined_call_operand.hbm [shape: bf16[16,64], index: 4, kind: output, shape index: {}]  }
   0x1   :  { %v200_v0 = vld [vmem:[%s281_s1] sm:$0xff]   ;;  %183 = vmatprep.subr.bf16.mxu0 %v226_v1  ;;  %189 = vmatprep.subr.bf16.mxu1 %v226_v1 }
   0x2   :  { %v201_v2 = vld [vmem:[%s280_s0] sm:$0xff]   ;;  %184 = vmatpush3.bf16.msra.mxu0 %v200_v0  ;;  %185 = vmatprep.mubr.msk.bf16.mxu0 %vm227_vm0, %v226_v1 }
   0x3   :  { %9 = vsyncpa [#allocation3], 0  ;;  %191 = vmatprep.mubr.msk.bf16.mxu1 %vm227_vm0, %v226_v1  ;;  %v80_v3 = vld [vmem:[%s282_s2] sm:$0xf]  ;;  %vm92_vm2 = vcmask 1043456   ;;  %vm88_vm3 = vcmask 64512  }
   0x4   :  { %v94_v4 = vsel %vm92_vm2, %v80_v3, 0  ;;  %v173_v10 = vld [vmem:[%s283_s3] ss:$0 sm:$0xff]  ;;  %s228_s2 = smov [#allocation2]   ;;  %vm151_vm5 = vcmask 519168  }
   0x5   :  { %186 = vmatmul.mubr.msk.bf16.vlgmr.msra.gmra.mrb[0].mxu0 %vm34_vm1, %v201_v2  ;;  %190 = vmatpush3.bf16.msra.mxu1 %v94_v4  ;;  %s159_s21 = sshll.u32 %s228_s2, 4  ;;  %s160_s21 = int_to_ptr.vmem [resolvable:$true] %s159_s21 }
   0x6   :  { %s202_s3 = scalar_lea.vmem %s160_s21, 128  ;;  %p207_p1 = scmp.lt.s32.totalorder %s160_s21, %s160_s21 }
   0x7   :  { %p203_p0 = scmp.ne.s32.totalorder %s160_s21, %s202_s3  ;;  %p208_p2 = scmp.lt.s32.totalorder %s202_s3, %s202_s3 }
   0x9   :  { %p209_p3 = por %p208_p2, %p207_p1 }
   0xb   :  { %p210_p4 = pnand %p209_p3, %p203_p0 }
  0xd8   :  { %v72_v5 = vpop.f32.mrb[0].mxu0 }
  0xd9   :  { %v187_v6 = vpop.f32.mrb[1].mxu0 }
  0xda   :  { %v75_v7 = vpop.f32.mrb[2].mxu0 }
  0xdb   :  { %v79_v8 = vpack.c.bf16 %v75_v7, %v72_v5  ;;  %v188_v9 = vpop.f32.mrb[3].mxu0 }
  0xdd   :  { %192 = vmatmul.mubr.msk.bf16.vlgmr.msra.gmra.mrb[0].mxu1 %vm88_vm3, %v79_v8 }
 0x1b0   :  { %v130_v11 = vpop.f32.mrb[0].mxu1 }
 0x1b1   :  { %v131_v12 = vadd.f32 %v173_v10, %v130_v11  ;;  %v193_v13 = vpop.f32.mrb[1].mxu1 }
 0x1b2   :  { %v133_v14 = vpop.f32.mrb[2].mxu1 }
 0x1b3   :  { %vm137_vm4 = vcmp.ge.f32.partialorder %v131_v12, 0.0  ;;  %v139_v15 = vmul.f32 0.01, %v131_v12  ;;  %v134_v16 = vadd.f32 %v173_v10, %v133_v14  ;;  %v194_v17 = vpop.f32.mrb[3].mxu1 }
 0x1b5   :  { %v141_v18 = vsel %vm137_vm4, %v131_v12, %v139_v15  ;;  %vm138_vm6 = vcmp.ge.f32.partialorder %v134_v16, 0.0  ;;  %v140_v19 = vmul.f32 0.01, %v134_v16 }
 0x1b6   :  { %v177_v20 = vpack.c.bf16 %v141_v18, %v141_v18 }
 0x1b7   :  { %v142_v21 = vsel %vm138_vm6, %v134_v16, %v140_v19 }
 0x1b8   :  { %152 = vst.msk [vmem:[#allocation2] sm:$0xf] %vm151_vm5, %v177_v20  ;;  %v178_v22 = vpack.c.bf16 %v142_v21, %v142_v21 }
 0x1ba   :  { %153 = vst.msk [vmem:[#allocation2 + $0x4] sm:$0xf] %vm151_vm5, %v178_v22 }
 0x1bb   :  { %213 = shalt.err (!%p210_p4)
}
 0x1bc   :  { %s214_s24 = scalar_lea.hbm %s284_s4, 128 }
 0x1bd   :  { %p215_p5 = scmp.ne.s32.totalorder %s284_s4, %s214_s24  ;;  %p218_p6 = scmp.lt.u32.totalorder %s214_s24, %s284_s4 }
 0x1bf   :  { %p220_p7 = pnand %p218_p6, %p215_p5 }
 0x1c1   :  { %223 = shalt.err (!%p220_p7)
}
 0x1c2   :  { %s229_s29 = smov 64   ;;  %s230_s30 = smov 4  }
 0x1c3   :  { %165 = dma.vmem_to_hbm [thread:$0]  %s160_s21, 128, %s284_s4, [#allocation3], %s229_s29, %s229_s29, %s230_s30  }
 0x1c4   :  { %224 = dma.done.wait [#allocation3], 128  }
 0x1c5   :  { %225 = vsyncadd [#allocation3], 4294967168 }
 0x1c6   :  { %169 = vsyncpa [#allocation3], 1 }

</bundles_post_ra>
